<compile_context>
chip_gen: v7x
topology: tpu7x:2x2x1
jax: 0.10.0
libtpu: 0.0.40
codegen_flags: <defaults>
</compile_context>

<pallas_src>
import functools

import jax
import jax.numpy as jnp
import numpy as np
from jax.experimental import pallas as pl
from jax.experimental.pallas import tpu as pltpu

HIGHEST = jax.lax.Precision.HIGHEST


def _supr_ens_kernel(x_ref, w_ref, point_ref, supp_ref, zsinv_ref,
                     out_ref, img_acc_ref, *,
                     scale, ce_w, inv_ens, eps_cos, eps_norm_sq, n_sub, c_pad):
    """Grid = (B tiles [parallel], ensemble members, K tiles over image dim P)."""
    e = pl.program_id(1)
    k = pl.program_id(2)

    @pl.when(jnp.logical_and(e == 0, k == 0))
    def _():
        out_ref[...] = jnp.zeros_like(out_ref)

    @pl.when(k == 0)
    def _():
        img_acc_ref[...] = jnp.zeros_like(img_acc_ref)

    # --- image encoder stub: (tb, tk) @ (tk, D), bf16 MXU inputs, f32 accum.
    img_acc_ref[...] += jnp.dot(x_ref[...], w_ref[0],
                                preferred_element_type=jnp.float32)

    @pl.when(k == pl.num_programs(2) - 1)
    def _():
        img_raw = img_acc_ref[...]                                   # (tb, D) f32
        inv_norm = jax.lax.rsqrt(
            jnp.maximum(jnp.sum(img_raw * img_raw, axis=-1, keepdims=True),
                        eps_norm_sq))
        img_f = (img_raw * inv_norm).astype(jnp.bfloat16)            # unit norm

        # --- project_space without materializing proj:
        # alpha[b, s*Cp + c] = <img_f[b], supp[c, s]>
        # beta [b, s*Cp + c] = <img_f[b], (inv(G) @ supp)[c, s]>
        # <img_f, proj>[b, c] = ||proj[b, c]||^2 = sum_s alpha * beta
        alpha = jnp.dot(img_f, supp_ref[0], preferred_element_type=jnp.float32)
        beta = jnp.dot(img_f, zsinv_ref[0], preferred_element_type=jnp.float32)
        prod = alpha * beta                                          # (tb, S*C_pad)
        dot = prod[:, 0:c_pad]
        for s in range(1, n_sub):                                    # static unroll
            dot = dot + prod[:, s * c_pad:(s + 1) * c_pad]           # (tb, C_pad)

        # cosine along D:  ||img_f|| == 1,  ||proj|| = sqrt(dot)
        proj_norm = jnp.sqrt(jnp.maximum(dot, 0.0))
        cos = dot * pl.reciprocal(jnp.maximum(proj_norm, eps_cos), approx=True)
        logits = scale * cos                                         # (tb, C_pad)

        # point logits: logit_scale * img_f @ text_feature_point^T
        logits_point = scale * jnp.dot(img_f, point_ref[0],
                                       preferred_element_type=jnp.float32)

        # ensemble mean accumulated directly in the resident output block
        out_ref[...] += inv_ens * (ce_w * logits + (1.0 - ce_w) * logits_point)


def custom_clip_ens_forward(image, w_img, text_feat, *, logit_scale, ce_weight,
                            tk=256):
    """image: (B, 3, H, W) NCHW.  w_img: (E, P, D).  text_feat: (E, C, S+1, D)."""
    B = image.shape[0]
    E, P, D = w_img.shape
    x = image.reshape(B, -1).astype(jnp.float32)
    assert x.shape[1] == P
    assert D % 128 == 0, "feature dim must be lane aligned"
    assert tk % 128 == 0

    # --- glue: normalize synthetic text-encoder output, split point / subspace
    # features, invert the tiny (S x S) Gram matrices and precompute
    # zs_inv = inv(G) @ supp (loop invariant per ensemble member -> outside kernel).
    txt = text_feat.astype(jnp.float32)
    txt = txt / jnp.linalg.norm(txt, axis=-1, keepdims=True)
    point = txt[:, :, 0, :]                                          # (E, C, D)
    supp = txt[:, :, 1:, :]                                          # (E, C, S, D)
    C, S = point.shape[1], supp.shape[2]
    gram = jnp.einsum('ecsd,ectd->ecst', supp, supp, precision=HIGHEST)
    ginv = jnp.linalg.inv(gram)                                      # (E, C, S, S)
    zsinv = jnp.einsum('ecst,ectd->ecsd', ginv, supp, precision=HIGHEST)

    # --- padding: sublane-full batch tile, lane-dense classes, K-tiled P axis.
    B_pad = -(-B // 16) * 16
    if B_pad > 128:
        B_pad = -(-B_pad // 128) * 128
        tb = 128
    else:
        tb = B_pad
    C_pad = -(-C // 128) * 128
    P_pad = -(-P // tk) * tk
    n_k = P_pad // tk

    # bf16 MXU operand streams (f32 accumulation happens inside the kernel).
    x_p = jnp.zeros((B_pad, P_pad), jnp.bfloat16)
    x_p = x_p.at[:B, :P].set(x.astype(jnp.bfloat16))
    w_p = jnp.zeros((E, P_pad, D), jnp.bfloat16)
    w_p = w_p.at[:, :P, :].set(w_img.astype(jnp.bfloat16))

    point_pad = jnp.zeros((E, C_pad, D), jnp.bfloat16)
    point_pad = point_pad.at[:, :C, :].set(point.astype(jnp.bfloat16))
    point_t = jnp.transpose(point_pad, (0, 2, 1))                    # (E, D, C_pad)

    def _flatten_t(a):                                               # (E,C,S,D) -> (E, D, S*C_pad)
        a = jnp.transpose(a, (0, 2, 1, 3)).astype(jnp.bfloat16)      # (E, S, C, D)
        a_pad = jnp.zeros((E, S, C_pad, D), jnp.bfloat16).at[:, :, :C, :].set(a)
        return jnp.transpose(a_pad, (0, 3, 1, 2)).reshape(E, D, S * C_pad)

    supp_t = _flatten_t(supp)       # columns ordered s-major: col = s*C_pad + c
    zsinv_t = _flatten_t(zsinv)

    kernel = functools.partial(
        _supr_ens_kernel,
        scale=float(logit_scale), ce_w=float(ce_weight), inv_ens=1.0 / E,
        eps_cos=1e-7, eps_norm_sq=1e-24, n_sub=S, c_pad=C_pad)

    out_pad = pl.pallas_call(
        kernel,
        out_shape=jax.ShapeDtypeStruct((B_pad, C_pad), jnp.float32),
        grid_spec=pltpu.PrefetchScalarGridSpec(
            num_scalar_prefetch=0,
            grid=(B_pad // tb, E, n_k),
            in_specs=[
                pl.BlockSpec((tb, tk), lambda b, e, k: (b, k)),
                pl.BlockSpec((1, tk, D), lambda b, e, k: (e, k, 0)),
                pl.BlockSpec((1, D, C_pad), lambda b, e, k: (e, 0, 0)),
                pl.BlockSpec((1, D, S * C_pad), lambda b, e, k: (e, 0, 0)),
                pl.BlockSpec((1, D, S * C_pad), lambda b, e, k: (e, 0, 0)),
            ],
            out_specs=pl.BlockSpec((tb, C_pad), lambda b, e, k: (b, 0)),
            scratch_shapes=[pltpu.VMEM((tb, D), jnp.float32)],
        ),
        compiler_params=pltpu.CompilerParams(
            dimension_semantics=("parallel", "arbitrary", "arbitrary"),
            vmem_limit_bytes=32 * 1024 * 1024),
    )(x_p, w_p, point_t, supp_t, zsinv_t)

    return out_pad[:B, :C]


def _reference(image, w_img, text_feat, logit_scale, ce_weight):
    """Pure-JAX f32 mirror of the PyTorch eval path (label=None)."""
    B = image.shape[0]
    E = w_img.shape[0]
    x = image.reshape(B, -1).astype(jnp.float32)
    outs = []
    for e in range(E):
        img_raw = jnp.matmul(x, w_img[e], precision=HIGHEST)
        img_f = img_raw / jnp.linalg.norm(img_raw, axis=-1, keepdims=True)
        txt = text_feat[e]
        txt = txt / jnp.linalg.norm(txt, axis=-1, keepdims=True)
        point, supp = txt[:, 0, :], txt[:, 1:, :]
        gram = jnp.einsum('csd,ctd->cst', supp, supp, precision=HIGHEST)
        ginv = jnp.linalg.inv(gram)
        zs_inv = jnp.einsum('cst,ctd->csd', ginv, supp, precision=HIGHEST)
        beta = jnp.einsum('csd,bd->csb', zs_inv, img_f, precision=HIGHEST)
        proj = jnp.einsum('csd,csb->bcd', supp, beta, precision=HIGHEST)
        dotp = jnp.sum(img_f[:, None, :] * proj, axis=-1)
        n1 = jnp.linalg.norm(img_f, axis=-1, keepdims=True)
        n2 = jnp.linalg.norm(proj, axis=-1)
        cos = dotp / jnp.maximum(n1 * n2, 1e-7)
        logits = logit_scale * cos
        logits_point = logit_scale * jnp.matmul(img_f, point.T, precision=HIGHEST)
        outs.append(ce_weight * logits + (1.0 - ce_weight) * logits_point)
    return jnp.stack(outs).mean(0)


if __name__ == "__main__":
    # small synthetic config: ensemble_num=2, batch=4, n_cls=8, space_dim=4, dim=128
    E, B, C, S, D = 2, 4, 8, 4, 128
    H = W = 16
    P = 3 * H * W

    key = jax.random.PRNGKey(0)
    k_img, k_w, k_txt = jax.random.split(key, 3)
    image = jax.random.normal(k_img, (B, 3, H, W), dtype=jnp.float32)
    w_img = 0.02 * jax.random.normal(k_w, (E, P, D), dtype=jnp.float32)
    text_feat = 0.02 * jax.random.normal(k_txt, (E, C, S + 1, D), dtype=jnp.float32)

    logit_scale = float(np.exp(np.log(1.0 / 0.07)))   # CLIP logit_scale.exp()
    ce_weight = 0.7                                   # cfg.TRAINER.SUPR.LAMBDA

    out = custom_clip_ens_forward(image, w_img, text_feat,
                                  logit_scale=logit_scale, ce_weight=ce_weight)
    out = jax.block_until_ready(out)

    ref = jax.block_until_ready(
        _reference(image, w_img, text_feat, logit_scale, ce_weight))
    np.testing.assert_allclose(np.asarray(out), np.asarray(ref),
                               rtol=5e-2, atol=5e-2)
    print("KERNEL_OK")
</pallas_src>

<mosaic_0001>
module attributes {stable_mosaic.version = 11 : i64} {
  func.func @_supr_ens_kernel(%arg0: i32, %arg1: i32, %arg2: i32, %arg3: memref<16x256xbf16, #tpu.memory_space<vmem>>, %arg4: memref<1x256x128xbf16, #tpu.memory_space<vmem>>, %arg5: memref<1x128x128xbf16, #tpu.memory_space<vmem>>, %arg6: memref<1x128x512xbf16, #tpu.memory_space<vmem>>, %arg7: memref<1x128x512xbf16, #tpu.memory_space<vmem>>, %arg8: memref<16x128xf32, #tpu.memory_space<vmem>>, %arg9: memref<16x128xf32, #tpu.memory_space<vmem>>) attributes {dimension_semantics = [#tpu.dimension_semantics<parallel>, #tpu.dimension_semantics<arbitrary>, #tpu.dimension_semantics<arbitrary>], iteration_bounds = array<i64: 1, 2, 3>, scalar_prefetch = 0 : i64, scratch_operands = 1 : i64, tpu.core_type = #tpu.core_type<tc>, window_params = [{transform_indices = @transform_0, window_bounds = array<i64: 16, 256>}, {transform_indices = @transform_1, window_bounds = array<i64: 1, 256, 128>}, {transform_indices = @transform_2, window_bounds = array<i64: 1, 128, 128>}, {transform_indices = @transform_3, window_bounds = array<i64: 1, 128, 512>}, {transform_indices = @transform_4, window_bounds = array<i64: 1, 128, 512>}, {transform_indices = @transform_5, window_bounds = array<i64: 16, 128>}]} {
    %c0_i32 = arith.constant 0 : i32
    %0 = arith.cmpi eq, %arg1, %c0_i32 : i32
    %c0_i32_0 = arith.constant 0 : i32
    %1 = arith.cmpi eq, %arg2, %c0_i32_0 : i32
    %2 = arith.andi %0, %1 : i1
    %3 = arith.extui %2 : i1 to i32
    %c0_i32_1 = arith.constant 0 : i32
    %4 = arith.cmpi ne, %3, %c0_i32_1 : i32
    scf.if %4 {
      %cst_13 = arith.constant 0.000000e+00 : f32
      %18 = vector.broadcast %cst_13 : f32 to vector<16x128xf32>
      %c0_14 = arith.constant 0 : index
      %c0_15 = arith.constant 0 : index
      %19 = vector.load %arg8[%c0_14, %c0_15] : memref<16x128xf32, #tpu.memory_space<vmem>>, vector<16x128xf32>
      tpu.vector_store %arg8[%c0_14, %c0_15], %18 {strides = array<i32>} : memref<16x128xf32, #tpu.memory_space<vmem>>, vector<16x128xf32>,
    } else {
    }
    %c0_i32_2 = arith.constant 0 : i32
    %5 = arith.cmpi eq, %arg2, %c0_i32_2 : i32
    %6 = arith.extui %5 : i1 to i32
    %c0_i32_3 = arith.constant 0 : i32
    %7 = arith.cmpi ne, %6, %c0_i32_3 : i32
    scf.if %7 {
      %cst_13 = arith.constant 0.000000e+00 : f32
      %18 = vector.broadcast %cst_13 : f32 to vector<16x128xf32>
      %c0_14 = arith.constant 0 : index
      %c0_15 = arith.constant 0 : index
      %19 = vector.load %arg9[%c0_14, %c0_15] : memref<16x128xf32, #tpu.memory_space<vmem>>, vector<16x128xf32>
      tpu.vector_store %arg9[%c0_14, %c0_15], %18 {strides = array<i32>} : memref<16x128xf32, #tpu.memory_space<vmem>>, vector<16x128xf32>,
    } else {
    }
    %c0 = arith.constant 0 : index
    %c0_4 = arith.constant 0 : index
    %8 = vector.load %arg9[%c0, %c0_4] : memref<16x128xf32, #tpu.memory_space<vmem>>, vector<16x128xf32>
    %c0_5 = arith.constant 0 : index
    %c0_6 = arith.constant 0 : index
    %9 = vector.load %arg3[%c0_5, %c0_6] : memref<16x256xbf16, #tpu.memory_space<vmem>>, vector<16x256xbf16>
    %c0_7 = arith.constant 0 : index
    %c0_8 = arith.constant 0 : index
    %c0_9 = arith.constant 0 : index
    %10 = vector.load %arg4[%c0_7, %c0_8, %c0_9] : memref<1x256x128xbf16, #tpu.memory_space<vmem>>, vector<1x256x128xbf16>
    %11 = vector.shape_cast %10 : vector<1x256x128xbf16> to vector<256x128xbf16>
    %cst = arith.constant dense<0.000000e+00> : vector<16x128xf32>
    %12 = tpu.matmul %9, %11, %cst {dimension_numbers = #tpu.dot_dimension_numbers<[1], [0], [0], [1], [0, 0, 1, 1], [], []>} : vector<16x256xbf16>, vector<256x128xbf16>, vector<16x128xf32> -> vector<16x128xf32>
    %13 = arith.addf %8, %12 : vector<16x128xf32>
    %c0_10 = arith.constant 0 : index
    %c0_11 = arith.constant 0 : index
    %14 = vector.load %arg9[%c0_10, %c0_11] : memref<16x128xf32, #tpu.memory_space<vmem>>, vector<16x128xf32>
    tpu.vector_store %arg9[%c0_10, %c0_11], %13 {strides = array<i32>} : memref<16x128xf32, #tpu.memory_space<vmem>>, vector<16x128xf32>,
    %c2_i32 = arith.constant 2 : i32
    %15 = arith.cmpi eq, %arg2, %c2_i32 : i32
    %16 = arith.extui %15 : i1 to i32
    %c0_i32_12 = arith.constant 0 : i32
    %17 = arith.cmpi ne, %16, %c0_i32_12 : i32
    scf.if %17 {
      %c0_13 = arith.constant 0 : index
      %c0_14 = arith.constant 0 : index
      %18 = vector.load %arg9[%c0_13, %c0_14] : memref<16x128xf32, #tpu.memory_space<vmem>>, vector<16x128xf32>
      %19 = arith.mulf %18, %18 : vector<16x128xf32>
      %cst_15 = arith.constant dense<0.000000e+00> : vector<16xf32>
      %20 = vector.multi_reduction <add>, %19, %cst_15 [1] : vector<16x128xf32> to vector<16xf32>
      %21 = vector.shape_cast %20 : vector<16xf32> to vector<16x1xf32>
      %cst_16 = arith.constant 1.000000e-24 : f32
      %22 = vector.broadcast %cst_16 : f32 to vector<16x1xf32>
      %23 = arith.maximumf %21, %22 : vector<16x1xf32>
      %24 = math.rsqrt %23 : vector<16x1xf32>
      %25 = vector.broadcast %24 : vector<16x1xf32> to vector<16x128xf32>
      %26 = arith.mulf %18, %25 : vector<16x128xf32>
      %27 = arith.truncf %26 : vector<16x128xf32> to vector<16x128xbf16>
      %c0_17 = arith.constant 0 : index
      %c0_18 = arith.constant 0 : index
      %c0_19 = arith.constant 0 : index
      %28 = vector.load %arg6[%c0_17, %c0_18, %c0_19] : memref<1x128x512xbf16, #tpu.memory_space<vmem>>, vector<1x128x512xbf16>
      %29 = vector.shape_cast %28 : vector<1x128x512xbf16> to vector<128x512xbf16>
      %cst_20 = arith.constant dense<0.000000e+00> : vector<16x512xf32>
      %30 = tpu.matmul %27, %29, %cst_20 {dimension_numbers = #tpu.dot_dimension_numbers<[1], [0], [0], [1], [0, 0, 1, 1], [], []>} : vector<16x128xbf16>, vector<128x512xbf16>, vector<16x512xf32> -> vector<16x512xf32>
      %c0_21 = arith.constant 0 : index
      %c0_22 = arith.constant 0 : index
      %c0_23 = arith.constant 0 : index
      %31 = vector.load %arg7[%c0_21, %c0_22, %c0_23] : memref<1x128x512xbf16, #tpu.memory_space<vmem>>, vector<1x128x512xbf16>
      %32 = vector.shape_cast %31 : vector<1x128x512xbf16> to vector<128x512xbf16>
      %cst_24 = arith.constant dense<0.000000e+00> : vector<16x512xf32>
      %33 = tpu.matmul %27, %32, %cst_24 {dimension_numbers = #tpu.dot_dimension_numbers<[1], [0], [0], [1], [0, 0, 1, 1], [], []>} : vector<16x128xbf16>, vector<128x512xbf16>, vector<16x512xf32> -> vector<16x512xf32>
      %34 = arith.mulf %30, %33 : vector<16x512xf32>
      %35 = vector.extract_strided_slice %34 {offsets = [0, 0], sizes = [16, 128], strides = [1, 1]} : vector<16x512xf32> to vector<16x128xf32>
      %36 = vector.extract_strided_slice %34 {offsets = [0, 128], sizes = [16, 128], strides = [1, 1]} : vector<16x512xf32> to vector<16x128xf32>
      %37 = arith.addf %35, %36 : vector<16x128xf32>
      %38 = vector.extract_strided_slice %34 {offsets = [0, 256], sizes = [16, 128], strides = [1, 1]} : vector<16x512xf32> to vector<16x128xf32>
      %39 = arith.addf %37, %38 : vector<16x128xf32>
      %40 = vector.extract_strided_slice %34 {offsets = [0, 384], sizes = [16, 128], strides = [1, 1]} : vector<16x512xf32> to vector<16x128xf32>
      %41 = arith.addf %39, %40 : vector<16x128xf32>
      %cst_25 = arith.constant 0.000000e+00 : f32
      %42 = vector.broadcast %cst_25 : f32 to vector<16x128xf32>
      %43 = arith.maximumf %41, %42 : vector<16x128xf32>
      %44 = math.sqrt %43 : vector<16x128xf32>
      %cst_26 = arith.constant 1.000000e-07 : f32
      %45 = vector.broadcast %cst_26 : f32 to vector<16x128xf32>
      %46 = arith.maximumf %44, %45 : vector<16x128xf32>
      %47 = tpu.reciprocal %46 {approx = true} : vector<16x128xf32> -> vector<16x128xf32>
      %48 = arith.mulf %41, %47 : vector<16x128xf32>
      %cst_27 = arith.constant 14.2857141 : f32
      %49 = vector.broadcast %cst_27 : f32 to vector<16x128xf32>
      %50 = arith.mulf %49, %48 : vector<16x128xf32>
      %c0_28 = arith.constant 0 : index
      %c0_29 = arith.constant 0 : index
      %c0_30 = arith.constant 0 : index
      %51 = vector.load %arg5[%c0_28, %c0_29, %c0_30] : memref<1x128x128xbf16, #tpu.memory_space<vmem>>, vector<1x128x128xbf16>
      %52 = vector.shape_cast %51 : vector<1x128x128xbf16> to vector<128x128xbf16>
      %cst_31 = arith.constant dense<0.000000e+00> : vector<16x128xf32>
      %53 = tpu.matmul %27, %52, %cst_31 {dimension_numbers = #tpu.dot_dimension_numbers<[1], [0], [0], [1], [0, 0, 1, 1], [], []>} : vector<16x128xbf16>, vector<128x128xbf16>, vector<16x128xf32> -> vector<16x128xf32>
      %cst_32 = arith.constant 14.2857141 : f32
      %54 = vector.broadcast %cst_32 : f32 to vector<16x128xf32>
      %55 = arith.mulf %54, %53 : vector<16x128xf32>
      %c0_33 = arith.constant 0 : index
      %c0_34 = arith.constant 0 : index
      %56 = vector.load %arg8[%c0_33, %c0_34] : memref<16x128xf32, #tpu.memory_space<vmem>>, vector<16x128xf32>
      %cst_35 = arith.constant 0.699999988 : f32
      %57 = vector.broadcast %cst_35 : f32 to vector<16x128xf32>
      %58 = arith.mulf %57, %50 : vector<16x128xf32>
      %cst_36 = arith.constant 3.000000e-01 : f32
      %59 = vector.broadcast %cst_36 : f32 to vector<16x128xf32>
      %60 = arith.mulf %59, %55 : vector<16x128xf32>
      %61 = arith.addf %58, %60 : vector<16x128xf32>
      %cst_37 = arith.constant 5.000000e-01 : f32
      %62 = vector.broadcast %cst_37 : f32 to vector<16x128xf32>
      %63 = arith.mulf %62, %61 : vector<16x128xf32>
      %64 = arith.addf %56, %63 : vector<16x128xf32>
      %c0_38 = arith.constant 0 : index
      %c0_39 = arith.constant 0 : index
      %65 = vector.load %arg8[%c0_38, %c0_39] : memref<16x128xf32, #tpu.memory_space<vmem>>, vector<16x128xf32>
      tpu.vector_store %arg8[%c0_38, %c0_39], %64 {strides = array<i32>} : memref<16x128xf32, #tpu.memory_space<vmem>>, vector<16x128xf32>,
    } else {
    }
    return
  }
  func.func @transform_0(%arg0: i32, %arg1: i32, %arg2: i32) -> (i32, i32) {
    %c0_i32 = arith.constant 0 : i32
    return %arg0, %arg2 : i32, i32
  }
  func.func @transform_1(%arg0: i32, %arg1: i32, %arg2: i32) -> (i32, i32, i32) {
    %c0_i32 = arith.constant 0 : i32
    %c0_i32_0 = arith.constant 0 : i32
    return %arg1, %arg2, %c0_i32 : i32, i32, i32
  }
  func.func @transform_2(%arg0: i32, %arg1: i32, %arg2: i32) -> (i32, i32, i32) {
    %c0_i32 = arith.constant 0 : i32
    %c0_i32_0 = arith.constant 0 : i32
    %c0_i32_1 = arith.constant 0 : i32
    return %arg1, %c0_i32, %c0_i32_0 : i32, i32, i32
  }
  func.func @transform_3(%arg0: i32, %arg1: i32, %arg2: i32) -> (i32, i32, i32) {
    %c0_i32 = arith.constant 0 : i32
    %c0_i32_0 = arith.constant 0 : i32
    %c0_i32_1 = arith.constant 0 : i32
    return %arg1, %c0_i32, %c0_i32_0 : i32, i32, i32
  }
  func.func @transform_4(%arg0: i32, %arg1: i32, %arg2: i32) -> (i32, i32, i32) {
    %c0_i32 = arith.constant 0 : i32
    %c0_i32_0 = arith.constant 0 : i32
    %c0_i32_1 = arith.constant 0 : i32
    return %arg1, %c0_i32, %c0_i32_0 : i32, i32, i32
  }
  func.func @transform_5(%arg0: i32, %arg1: i32, %arg2: i32) -> (i32, i32) {
    %c0_i32 = arith.constant 0 : i32
    %c0_i32_0 = arith.constant 0 : i32
    return %arg0, %c0_i32 : i32, i32
  }
}

</mosaic_0001>

<bundles_post_ra>
// kernel: tpu_custom_call.1
= control target key start
LH: loop header
LB: loop body
LE: loop exit
PB: predicated region body
PF: predicated region fallthrough
CT: control target
= control target key end

     0   :  { %s2949_s0 = inlined_call_operand.hbm [shape: bf16[16,768], index: 0, kind: input, shape index: {}]   ;;  %s2950_s1 = inlined_call_operand.hbm [shape: bf16[2,768,128], index: 1, kind: input, shape index: {}]   ;;  %s2951_s2 = inlined_call_operand.hbm [shape: bf16[2,128,128], index: 2, kind: input, shape index: {}]   ;;  %s2952_s3 = inlined_call_operand.hbm [shape: bf16[2,128,512], index: 3, kind: input, shape index: {}]   ;;  %s2953_s4 = inlined_call_operand.hbm [shape: bf16[2,128,512], index: 4, kind: input, shape index: {}]   ;;  %s2954_s5 = inlined_call_operand.hbm [shape: f32[16,128], index: 5, kind: output, shape index: {}]  }
   0x1   :  { %2980 = sst [smem:[#allocation31_spill]] %s2949_s0 }
   0x2   :  { %2981 = sst [smem:[#allocation32_spill]] %s2950_s1 }
   0x3   :  { %2982 = sst [smem:[#allocation33_spill]] %s2952_s3 }
   0x4   :  { %2983 = sst [smem:[#allocation34_spill]] %s2954_s5 }
   0x5   :  { %10 = vsyncpa [#allocation4], 0 }
   0x6   :  { %12 = vsyncpa [#allocation4 + $0x1], 0 }
   0x7   :  { %13 = vsyncpa [#allocation7], 0 }
   0x8   :  { %15 = vsyncpa [#allocation7 + $0x1], 0 }
   0x9   :  { %16 = vsyncpa [#allocation10], 0 }
   0xa   :  { %18 = vsyncpa [#allocation10 + $0x1], 0 }
   0xb   :  { %19 = vsyncpa [#allocation5], 0  ;;  %s2357_s18 = smov 0   ;;  %s2359_s19 = smov 0  }
   0xc   :  { %s2361_s20 = smov 0   ;;  %s2363_s21 = smov 0  }
   0xd   :  { %s2365_s22 = smov 0   ;;  %s2367_s23 = smov 0  }
   0xe   :  { %s2369_s24 = smov 0   ;;  %s2371_s25 = smov 0  }
   0xf   :  { %s2373_s26 = smov 0   ;;  %s2375_s27 = smov 0  }
  0x10   :  { %s2377_s28 = smov 0   ;;  %s2379_s29 = smov 0  }
  0x11   :  { %s2381_s30 = smov 0   ;;  %s2383_s6 = smov 0  }
  0x12 LB: > { %2984 = sst [smem:[#allocation18_spill]] %s2257_s19  ;;  %s2426_s7 = sadd.s32 4294967295, %s2305_s6   ;;  %s2305_s6 = sphi %s2383_s6, %s25_s6   ;;  %s2301_s30 = sphi %s2381_s30, %s3057_s30   ;;  %s2297_s29 = sphi %s2379_s29, %s3056_s29   ;;  %s2293_s28 = sphi %s2377_s28, %s3055_s28   ;;  %s2289_s27 = sphi %s2375_s27, %s3054_s27   ;;  %s2285_s26 = sphi %s2373_s26, %s3053_s26   ;;  %s2281_s25 = sphi %s2371_s25, %s3052_s25   ;;  %s2277_s24 = sphi %s2369_s24, %s3051_s24   ;;  %s2273_s23 = sphi %s2367_s23, %s3046_s23   ;;  %s2269_s22 = sphi %s2365_s22, %s3050_s22   ;;  %s2265_s21 = sphi %s2363_s21, %s3044_s21   ;;  %s2261_s20 = sphi %s2361_s20, %s3043_s20   ;;  %s2257_s19 = sphi %s2359_s19, %s3042_s19   ;;  %s2253_s18 = sphi %s2357_s18, %s3041_s18  }
  0x13   : > { %2985 = sst [smem:[#allocation19_spill]] %s2261_s20  ;;  %s37_s8 = sadd.s32 1, %s2297_s29 }
  0x14   : > { %2986 = sst [smem:[#allocation20_spill]] %s2269_s22  ;;  %p38_p0 = scmp.ge.s32.totalorder %s37_s8, 3 }
  0x15   : > { %2987 = sst [smem:[#allocation21_spill]] %s2273_s23  ;;  %s40_s9 = sadd.s32 1, %s2301_s30 }
  0x16   : > { %2988 = sst [smem:[#allocation22_spill]] %s2289_s27  ;;  %p2963_p1 = scmp.eq.s32.totalorder %s2305_s6, 0 }
  0x17   : > { %2989 = sst [smem:[#allocation23_spill]] %s2293_s28  ;;  %p2962_p2 = scmp.eq.s32.totalorder %s2426_s7, 0 }
  0x18   : > { %s3059_s8 = smov (%p38_p0, %s37_s8), 0  ;;  %s3061_s9 = smov (!%p38_p0, %s40_s9), %s2301_s30 }
  0x19   : > { %2990 = sst [smem:[#allocation24_spill]] %s3059_s8  ;;  %s2437_s10 = ssub.s32 %s2297_s29, %s3059_s8 }
  0x1a   : > { %s81_s11 = sadd.s32 1, %s2273_s23  ;;  %p42_p3 = scmp.ge.s32.totalorder %s3061_s9, 2 }
  0x1b   : > { %p88_p5 = scmp.ne.s32.totalorder %s2273_s23, %s2269_s22  ;;  %p94_p6 = scmp.ne.s32.totalorder %s2269_s22, %s2265_s21 }
  0x1c   : > { %s3063_s9 = smov (%p42_p3, %s3061_s9), 0  ;;  %p2961_p11 = scmp.lt.s32.totalorder %s2305_s6, 6 }
  0x1d   : > { %2991 = sst [smem:[#allocation25_spill]] %s3063_s9  ;;  %p2448_p7 = por %p88_p5, %p2963_p1 }
  0x1e   : > { %p2454_p8 = por %p94_p6, %p2962_p2  ;;  %s2460_s14 = ssub.s32 %s2301_s30, %s3063_s9 }
  0x1f   : > { %s78_s15 = sor.u32 %s2460_s14, %s2437_s10  ;;  %s248_s17 = sand.u32 1, %s2273_s23  }
  0x20   : > { %s2993_s13 = scalar_select %p2454_p8, 1, 0 }
  0x21   : > { %p79_p10 = scmp.eq.s32.totalorder %s78_s15, 0  ;;  %s1534_s8 = sshll.u32 %s248_s17, 7 }
  0x22   : > { %2994 = sst [smem:[#allocation26_spill]] %s2993_s13  ;;  %s1535_s5 = sshll.u32 %s2297_s29, 5 }
  0x23   : > { %s2469_s21 = scalar_select %p79_p10, %s2273_s23, %s81_s11  }
  0x24   : > { %s1703_s27 = smul.u32 96, %s2301_s30  ;;  %s250_s28 = scalar_lea.vmem [#allocation6], %s1534_s8 }
  0x25   : > { %2995 = sst [smem:[#allocation27_spill]] %s2469_s21  ;;  %s259_s22 = sshll.u32 %s250_s28, 4  ;;  %s2473_s22 = int_to_ptr.vmem [resolvable:$true] %s259_s22 }
  0x26   : > { %p2479_p12 = pnand %p2961_p11, %p2448_p7  ;;  %s256_s15 = sadd.s32 %s1703_s27, %s1535_s5 }
  0x27   : > { %s1536_s16 = sshll.u32 %s256_s15, 6  ;;  %s2997_s1 = sld [smem:[#allocation32_spill]] }
  0x28   : > { %s2998_s21 = sand.u32 1, %s2305_s6   ;;  %p2001_p0 = pneg %p2479_p12 }
  0x29   : > { %s2490_s28 = scalar_lea.sflag [#allocation7], %s2998_s21 }
  0x2d   : > { %s2486_s17 = scalar_lea.hbm %s2997_s1, %s1536_s16  ;;  %s2004_s12 = scalar_lea.hbm %s2997_s1, 12288 }
  0x2e   : > { %s1999_s8 = scalar_lea.hbm %s2486_s17, 2048  ;;  %p2005_p6 = scmp.lt.u32.totalorder %s2486_s17, %s2997_s1 }
  0x2f   : > { %p2000_p13 = scmp.ne.s32.totalorder %s2486_s17, %s1999_s8  ;;  %p2006_p7 = scmp.lt.u32.totalorder %s2004_s12, %s1999_s8 }
  0x30   : > { %p2008_p4 = scmp.lt.u32.totalorder %s1999_s8, %s2486_s17 }
  0x31   : > { %p2002_p3 = pnand %p2001_p0, %p2000_p13  ;;  %p2007_p10 = por %p2006_p7, %p2005_p6 }
  0x33   : > { %p2003_p5 = pneg %p2002_p3  ;;  %p2009_p11 = por %p2008_p4, %p2007_p10 }
  0x35   : > { %p2010_p2 = pnand %p2009_p11, %p2003_p5 }
  0x37   : > { %2013 = shalt.err (!%p2010_p2)
}
  0x38   : > { %s2014_s21 = scalar_lea.vmem %s2473_s22, 2048  ;;  %s2307_s15 = smov [#allocation6]  }
  0x39   : > { %p2015_p13 = scmp.ne.s32.totalorder %s2473_s22, %s2014_s21  ;;  %s2019_s11 = sshll.u32 %s2307_s15, 4  ;;  %s2020_s11 = int_to_ptr.vmem [resolvable:$false] %s2019_s11 }
  0x3a   : > { %s2021_s5 = scalar_lea.vmem %s2020_s11, 4096  ;;  %p2022_p9 = scmp.lt.s32.totalorder %s2473_s22, %s2020_s11 }
  0x3b   : > { %p2017_p3 = pnand %p2015_p13, %p2001_p0  ;;  %p2023_p6 = scmp.lt.s32.totalorder %s2021_s5, %s2014_s21 }
  0x3d   : > { %p2018_p1 = pneg %p2017_p3  ;;  %p2024_p7 = por %p2023_p6, %p2022_p9 }
  0x3f   : > { %p2025_p4 = pnand %p2024_p7, %p2018_p1 }
  0x41   : > { %2028 = shalt.err (!%p2025_p4)
}
  0x42   : > { %s2964_s8 = smov 64   ;;  %s2965_s27 = smov 4  }
  0x43   : > { %1724 = dma.hbm_to_vmem [thread:$0]  (!%p2479_p12), %s2486_s17, 2048, %s2473_s22, %s2490_s28, %s2964_s8, %s2964_s8, %s2965_s27  }
  0x44   : > { %p1546_p1 = scmp.ge.s32.totalorder %s2305_s6, 1  ;;  %p330_p2 = scmp.lt.s32.totalorder %s2305_s6, 7 }
  0x45   : > { %s107_s13 = sadd.s32 1, %s2261_s20  ;;  %p3001_p11 = scmp.eq.s32.totalorder %s2460_s14, 0 }
  0x46   : > { %p2523_p9 = pnand %p1546_p1, %p330_p2  ;;  %p114_p0 = scmp.ne.s32.totalorder %s2261_s20, %s2257_s19 }
  0x47   : > { %s2531_s16 = scalar_select %p3001_p11, %s2261_s20, %s107_s13  }
  0x48   : > { %s2999_s12 = scalar_select %p2523_p9, 1, 0 }
  0x49   : > { %3002 = sst [smem:[#allocation29_spill]] %s2531_s16  ;;  %p120_p5 = scmp.ne.s32.totalorder %s2257_s19, %s2253_s18 }
  0x4a   : > { %3000 = sst [smem:[#allocation28_spill]] %s2999_s12  ;;  %s271_s21 = sand.u32 1, %s2261_s20  }
  0x4b   : > { %p3003_p10 = scmp.eq.s32.totalorder %s2305_s6, 0  ;;  %p3004_p3 = scmp.eq.s32.totalorder %s2426_s7, 0 }
  0x4c   : > { %s2546_s9 = sshll.u32 %s271_s21, 6  ;;  %s2548_s17 = sshll.u32 %s271_s21, 8 }
  0x4d   : > { %p116_p13 = por %p114_p0, %p3003_p10  ;;  %p2542_p6 = por %p120_p5, %p3004_p3 }
  0x4e   : > { %p3007_p12 = scmp.lt.s32.totalorder %s2305_s6, 6  ;;  %s2966_s18 = sshll.u32 %s2301_s30, 12 }
  0x4f   : > { %s3005_s22 = scalar_select %p2542_p6, 1, 0 }
  0x50   : > { %p2552_p7 = pnand %p3007_p12, %p116_p13  ;;  %s294_s15 = scalar_lea.vmem [#allocation9], %s2548_s17 }
  0x51   : > { %3006 = sst [smem:[#allocation30_spill]] %s3005_s22  ;;  %s301_s11 = sshll.u32 %s294_s15, 4  ;;  %s2565_s11 = int_to_ptr.vmem [resolvable:$true] %s301_s11 }
  0x52   : > { %s3008_s14 = scalar_select %p2552_p7, 1, 0 }
  0x53   : > { %s3009_s3 = sld [smem:[#allocation33_spill]]  ;;  %s3010_s21 = sand.u32 1, %s2305_s6  }
  0x54   : > { %s2569_s27 = scalar_lea.sflag [#allocation10], %s3010_s21  ;;  %p2575_p1 = pneg %p2552_p7 }
  0x59   : > { %s2563_s8 = scalar_lea.hbm %s3009_s3, %s2966_s18  ;;  %s2034_s18 = scalar_lea.hbm %s3009_s3, 8192 }
  0x5a   : > { %s2029_s1 = scalar_lea.hbm %s2563_s8, 4096  ;;  %p2035_p0 = scmp.lt.u32.totalorder %s2563_s8, %s3009_s3 }
  0x5b   : > { %p2030_p4 = scmp.ne.s32.totalorder %s2563_s8, %s2029_s1  ;;  %p2036_p5 = scmp.lt.u32.totalorder %s2034_s18, %s2029_s1 }
  0x5c   : > { %p2038_p13 = scmp.lt.u32.totalorder %s2029_s1, %s2563_s8 }
  0x5d   : > { %p2032_p2 = pnand %p2575_p1, %p2030_p4  ;;  %p2037_p10 = por %p2036_p5, %p2035_p0 }
  0x5f   : > { %p2033_p11 = pneg %p2032_p2  ;;  %p2039_p3 = por %p2038_p13, %p2037_p10 }
  0x61   : > { %p2040_p12 = pnand %p2039_p3, %p2033_p11 }
  0x63   : > { %2043 = shalt.err (!%p2040_p12)
}
  0x64   : > { %s2044_s21 = scalar_lea.vmem %s2565_s11, 4096  ;;  %s2310_s5 = smov [#allocation9]  }
  0x65   : > { %p2045_p4 = scmp.ne.s32.totalorder %s2565_s11, %s2044_s21  ;;  %s2049_s13 = sshll.u32 %s2310_s5, 4  ;;  %s2050_s13 = int_to_ptr.vmem [resolvable:$false] %s2049_s13 }
  0x66   : > { %s2051_s23 = scalar_lea.vmem %s2050_s13, 8192  ;;  %p2052_p8 = scmp.lt.s32.totalorder %s2565_s11, %s2050_s13 }
  0x67   : > { %p2047_p2 = pnand %p2045_p4, %p2575_p1  ;;  %p2053_p9 = scmp.lt.s32.totalorder %s2051_s23, %s2044_s21 }
  0x69   : > { %p2048_p6 = pneg %p2047_p2  ;;  %p2054_p0 = por %p2053_p9, %p2052_p8 }
  0x6b   : > { %p2055_p5 = pnand %p2054_p0, %p2048_p6 }
  0x6d   : > { %2058 = shalt.err (!%p2055_p5)
}
  0x6e   : > { %s2978_s1 = smov 256   ;;  %s2979_s16 = smov 16  }
  0x6f   : > { %1730 = dma.hbm_to_vmem [thread:$0]  (!%p2552_p7), %s2563_s8, 4096, %s2565_s11, %s2569_s27, %s2978_s1, %s2978_s1, %s2979_s16  }
  0x70   : > { %s3012_s18 = sshll.u32 %s2301_s30, 12  ;;  %s315_s23 = scalar_lea.vmem [#allocation11], %s2548_s17 }
  0x71   : > { %s2607_s13 = scalar_lea.hbm %s2953_s4, %s3012_s18  ;;  %s322_s3 = sshll.u32 %s315_s23, 4  ;;  %s2610_s3 = int_to_ptr.vmem [resolvable:$true] %s322_s3 }
  0x72   : > { %s53_s20 = sadd.s32 1, %s2285_s26  ;;  %p3013_p8 = scmp.eq.s32.totalorder %s2437_s10, 0 }
  0x73   : > { %p60_p9 = scmp.ne.s32.totalorder %s2285_s26, %s2281_s25  ;;  %p66_p6 = scmp.ne.s32.totalorder %s2281_s25, %s2277_s24 }
  0x74   : > { %s2616_s22 = scalar_select %p3013_p8, %s2285_s26, %s53_s20  }
  0x75   : > { %s222_s19 = sand.u32 1, %s2285_s26   ;;  %s1648_s12 = sshll.u32 %s2297_s29, 7 }
  0x76   : > { %p3014_p11 = scmp.eq.s32.totalorder %s2305_s6, 0  ;;  %p3015_p13 = scmp.eq.s32.totalorder %s2426_s7, 0 }
  0x77   : > { %s1531_s11 = sshll.u32 %s222_s19, 4  ;;  %s3017_s0 = sld [smem:[#allocation31_spill]] }
  0x78   : > { %p62_p10 = por %p3014_p11, %p60_p9  ;;  %p2628_p3 = por %p3015_p13, %p66_p6 }
  0x79   : > { %s226_s20 = scalar_lea.vmem [#allocation3], %s1531_s11  ;;  %p3018_p12 = scmp.lt.s32.totalorder %s2305_s6, 6 }
  0x7a   : > { %s3016_s8 = scalar_select %p2628_p3, 1, 0 }
  0x7b   : > { %s236_s24 = sshll.u32 %s226_s20, 4  ;;  %p2639_p4 = pnand %p3018_p12, %p62_p10  ;;  %s2643_s24 = int_to_ptr.vmem [resolvable:$true] %s236_s24 }
  0x7c   : > { %s2645_s5 = scalar_lea.sflag [#allocation4], %s222_s19 }
  0x7d   : > { %s2635_s21 = scalar_lea.hbm %s3017_s0, %s1648_s12  ;;  %p2061_p0 = pneg %p2639_p4 }
  0x7e   : > { %s2059_s23 = scalar_lea.hbm %s2635_s21, 256  ;;  %s2064_s17 = scalar_lea.hbm %s3017_s0, 768 }
  0x7f   : > { %p2060_p2 = scmp.ne.s32.totalorder %s2635_s21, %s2059_s23  ;;  %p2065_p9 = scmp.lt.u32.totalorder %s2635_s21, %s3017_s0 }
  0x80   : > { %p2066_p6 = scmp.lt.u32.totalorder %s2064_s17, %s2059_s23  ;;  %p2068_p10 = scmp.lt.u32.totalorder %s2059_s23, %s2635_s21 }
  0x81   : > { %p2062_p5 = pnand %p2061_p0, %p2060_p2 }
  0x82   : > { %p2067_p11 = por %p2066_p6, %p2065_p9 }
  0x83   : > { %p2063_p8 = pneg %p2062_p5 }
  0x84   : > { %p2069_p13 = por %p2068_p10, %p2067_p11 }
  0x86   : > { %p2070_p12 = pnand %p2069_p13, %p2063_p8 }
  0x88   : > { %2073 = shalt.err (!%p2070_p12)
}
  0x89   : > { %s2074_s19 = scalar_lea.vmem %s2643_s24, 256  ;;  %s2313_s12 = smov [#allocation3]  }
  0x8a   : > { %p2075_p2 = scmp.ne.s32.totalorder %s2643_s24, %s2074_s19  ;;  %s2079_s11 = sshll.u32 %s2313_s12, 4  ;;  %s2080_s11 = int_to_ptr.vmem [resolvable:$false] %s2079_s11 }
  0x8b   : > { %s2081_s18 = scalar_lea.vmem %s2080_s11, 512  ;;  %p2082_p7 = scmp.lt.s32.totalorder %s2643_s24, %s2080_s11 }
  0x8c   : > { %p2077_p5 = pnand %p2075_p2, %p2061_p0  ;;  %p2083_p9 = scmp.lt.s32.totalorder %s2081_s18, %s2074_s19 }
  0x8e   : > { %p2078_p3 = pneg %p2077_p5  ;;  %p2084_p6 = por %p2083_p9, %p2082_p7 }
  0x90   : > { %p2085_p11 = pnand %p2084_p6, %p2078_p3 }
  0x92   : > { %2088 = shalt.err (!%p2085_p11)
}
  0x93   : > { %s2314_s23 = smov 384   ;;  %s2315_s17 = smov 128  }
  0x94   : > { %s2316_s20 = smov 8   ;;  %s1649_s12 = sshll.u32 %s2301_s30, 10 }
  0x95   : > { %1721 = dma.hbm_to_vmem [thread:$0]  (!%p2639_p4), %s2635_s21, 256, %s2643_s24, %s2645_s5, %s2314_s23, %s2315_s17, %s2316_s20  }
  0x96   : > { %s273_s1 = scalar_lea.vmem [#allocation8], %s2546_s9  ;;  %s2678_s18 = scalar_lea.hbm %s2951_s2, %s1649_s12 }
  0x97   : > { %s280_s16 = sshll.u32 %s273_s1, 4  ;;  %s2089_s0 = scalar_lea.hbm %s2678_s18, 1024  ;;  %s2680_s16 = int_to_ptr.vmem [resolvable:$true] %s280_s16 }
  0x98   : > { %p2090_p7 = scmp.ne.s32.totalorder %s2678_s18, %s2089_s0  ;;  %s2094_s9 = scalar_lea.hbm %s2951_s2, 2048 }
  0x99   : > { %p2095_p4 = scmp.lt.u32.totalorder %s2678_s18, %s2951_s2  ;;  %p2096_p8 = scmp.lt.u32.totalorder %s2094_s9, %s2089_s0 }
  0x9a   : > { %p2092_p3 = pnand %p2090_p7, %p2575_p1  ;;  %p2098_p13 = scmp.lt.u32.totalorder %s2089_s0, %s2678_s18 }
  0x9b   : > { %p2097_p10 = por %p2096_p8, %p2095_p4 }
  0x9c   : > { %p2093_p0 = pneg %p2092_p3 }
  0x9d   : > { %p2099_p12 = por %p2098_p13, %p2097_p10 }
  0x9f   : > { %p2100_p2 = pnand %p2099_p12, %p2093_p0 }
  0xa1   : > { %2103 = shalt.err (!%p2100_p2)
}
  0xa2   : > { %s2104_s5 = scalar_lea.vmem %s2680_s16, 1024  ;;  %s2317_s23 = smov [#allocation8]  }
  0xa3   : > { %p2105_p5 = scmp.ne.s32.totalorder %s2680_s16, %s2104_s5  ;;  %s2109_s17 = sshll.u32 %s2317_s23, 4  ;;  %s2110_s17 = int_to_ptr.vmem [resolvable:$false] %s2109_s17 }
  0xa4   : > { %s2111_s20 = scalar_lea.vmem %s2110_s17, 2048  ;;  %p2112_p11 = scmp.lt.s32.totalorder %s2680_s16, %s2110_s17 }
  0xa5   : > { %p2107_p9 = pnand %p2105_p5, %p2575_p1  ;;  %p2113_p7 = scmp.lt.s32.totalorder %s2111_s20, %s2104_s5 }
  0xa7   : > { %p2108_p6 = pneg %p2107_p9  ;;  %p2114_p3 = por %p2113_p7, %p2112_p11 }
  0xa9   : > { %p2115_p4 = pnand %p2114_p3, %p2108_p6 }
  0xab   : > { %2118 = shalt.err (!%p2115_p4)
}
  0xac   : > { %p3020_p0 = scmp.ne.s32.totalorder %s3008_s14, 0  ;;  %s3021_s0 = smov 4  }
  0xad   : > { %s3022_s12 = smov 64   ;;  %s2119_s11 = scalar_lea.hbm %s2607_s13, 4096 }
  0xae   : > { %1727 = dma.hbm_to_vmem [thread:$0]  (!%p3020_p0), %s2678_s18, 1024, %s2680_s16, %s2490_s28, %s3022_s12, %s3022_s12, %s3021_s0  }
  0xaf   : > { %p2120_p8 = scmp.ne.s32.totalorder %s2607_s13, %s2119_s11  ;;  %s2124_s24 = scalar_lea.hbm %s2953_s4, 8192 }
  0xb0   : > { %p2125_p12 = scmp.lt.u32.totalorder %s2607_s13, %s2953_s4  ;;  %p2126_p2 = scmp.lt.u32.totalorder %s2124_s24, %s2119_s11 }
  0xb1   : > { %p2122_p10 = pnand %p2120_p8, %p2575_p1  ;;  %p2128_p9 = scmp.lt.u32.totalorder %s2119_s11, %s2607_s13 }
  0xb2   : > { %p2127_p5 = por %p2126_p2, %p2125_p12 }
  0xb3   : > { %p2123_p13 = pneg %p2122_p10 }
  0xb4   : > { %p2129_p6 = por %p2128_p9, %p2127_p5 }
  0xb6   : > { %p2130_p11 = pnand %p2129_p6, %p2123_p13 }
  0xb8   : > { %2133 = shalt.err (!%p2130_p11)
}
  0xb9   : > { %s2134_s28 = scalar_lea.vmem %s2610_s3, 4096  ;;  %s2318_s16 = smov [#allocation11]  }
  0xba   : > { %p2135_p7 = scmp.ne.s32.totalorder %s2610_s3, %s2134_s28  ;;  %s2139_s18 = sshll.u32 %s2318_s16, 4  ;;  %s2140_s18 = int_to_ptr.vmem [resolvable:$false] %s2139_s18 }
  0xbb   : > { %s2141_s10 = scalar_lea.vmem %s2140_s18, 8192  ;;  %p2142_p8 = scmp.lt.s32.totalorder %s2610_s3, %s2140_s18 }
  0xbc   : > { %p2137_p3 = pnand %p2135_p7, %p2575_p1  ;;  %p2143_p10 = scmp.lt.s32.totalorder %s2141_s10, %s2134_s28 }
  0xbe   : > { %p2138_p4 = pneg %p2137_p3  ;;  %p2144_p12 = por %p2143_p10, %p2142_p8 }
  0xc0   : > { %p2145_p2 = pnand %p2144_p12, %p2138_p4 }
  0xc2   : > { %2148 = shalt.err (!%p2145_p2)
}
  0xc3   : > { %s3023_s5 = smov 16   ;;  %s3024_s23 = smov 256  }
  0xc4   : > { %1733 = dma.hbm_to_vmem [thread:$0]  (!%p3020_p0), %s2607_s13, 4096, %s2610_s3, %s2569_s27, %s3024_s23, %s3024_s23, %s3023_s5  }
  0xc5   : > { %s3025_s15 = sld [smem:[#allocation28_spill]] }
  0xcb   : > { %p3026_p1 = scmp.ne.s32.totalorder %s3025_s15, 0 }
  0xcc   : > { %s336_s17 = sand.u32 (!%p3026_p1), 1, %s2281_s25   ;;  %p3027_p13 = scmp.ne.s32.totalorder (!%p3026_p1), %s3016_s8, 0 }
  0xcd   : > { %334 = sbr.rel (%p3026_p1) target bundleno = 1021 (0x3fd), region = 40  ;;  %s2735_s20 = sshll.u32 (!%p3026_p1), %s336_s17, 4 }
  0xce   : > { %s337_s0 = scalar_lea.sflag (!%p3026_p1), [#allocation4], %s336_s17  ;;  %s340_s12 = scalar_lea.vmem (!%p3026_p1), [#allocation3], %s2735_s20 }
  0xd4   : > { %2232 = dma.done.wait (%p3027_p13), %s337_s0, 256  }
  0xd5   : > { %2234 = vsyncadd (%p3027_p13), %s337_s0, 4294967040  ;;  %s3028_s14 = sld [smem:[#allocation20_spill]]  ;;  %s345_s3 = sand.u32 1, %s2426_s7  }
  0xd6   : > { %s3029_s11 = sld [smem:[#allocation26_spill]]  ;;  %s346_s19 = scalar_lea.sflag [#allocation7], %s345_s3 }
  0xdb   : > { %s347_s27 = sand.u32 1, %s3028_s14  }
  0xdc   : > { %s1548_s13 = sshll.u32 %s347_s27, 7  ;;  %p3030_p0 = scmp.ne.s32.totalorder %s3029_s11, 0 }
  0xdd   : > { %s2744_s21 = scalar_lea.vmem [#allocation6], %s1548_s13 }
  0xde   : > { %2236 = dma.done.wait (%p3030_p0), %s346_s19, 2048  }
  0xdf   : > { %2238 = vsyncadd (%p3030_p0), %s346_s19, 4294965248  ;;  %s3031_s24 = sld [smem:[#allocation18_spill]]  ;;  %s3032_s9 = sld [smem:[#allocation30_spill]] }
  0xe5   : > { %s356_s1 = sand.u32 1, %s3031_s24   ;;  %p3033_p5 = scmp.ne.s32.totalorder %s3032_s9, 0 }
  0xe6   : > { %s1549_s28 = sshll.u32 %s356_s1, 6 }
  0xe7   : > { %s2751_s8 = scalar_lea.vmem [#allocation8], %s1549_s28 }
  0xe8   : > { %2240 = dma.done.wait (%p3033_p5), %s346_s19, 1024  }
  0xe9   : > { %2242 = vsyncadd (%p3033_p5), %s346_s19, 4294966272  ;;  %s1550_s16 = sshll.u32 %s356_s1, 8  ;;  %s364_s18 = scalar_lea.sflag [#allocation10], %s345_s3 }
  0xea   : > { %s2757_s10 = scalar_lea.vmem [#allocation9], %s1550_s16 }
  0xeb   : > { %2244 = dma.done.wait (%p3033_p5), %s364_s18, 8192  }
  0xec   : > { %2246 = vsyncadd (%p3033_p5), %s364_s18, 4294959104  ;;  %s3034_s5 = sld [smem:[#allocation23_spill]]  ;;  %s3035_s23 = sld [smem:[#allocation22_spill]] }
  0xed   : > { %s2765_s15 = scalar_lea.vmem [#allocation11], %s1550_s16 }
  0xf2   : > { %p423_p9 = scmp.eq.s32.totalorder %s3034_s5, 0  ;;  %p424_p6 = scmp.eq.s32.totalorder %s3035_s23, 0 }
  0xf4   : > { %p425_p11 = pnand %p424_p6, %p423_p9 }
  0xf5   : > { %v2319_v0 = vmov (!%p425_p11), 0.0  }
  0xf6   : > { %428 = sbr.rel (%p425_p11) target bundleno = 253 (0xfd), region = 64  ;;  %429 = vst [vmem:[#allocation12] sm:$0xff] (!%p425_p11), %v2319_v0  ;;  %430 = vst [vmem:[#allocation12 + $0x8] sm:$0xff] (!%p425_p11), %v2319_v0 }
  0xfd PF: > { %s3036_s17 = sld [smem:[#allocation22_spill]] }
 0x103   : > { %p1552_p7 = scmp.ne.s32.totalorder %s3036_s17, 0 }
 0x104   : > { %v2320_v1 = vmov (!%p1552_p7), 0.0  }
 0x105   : > { %433 = sbr.rel (%p1552_p7) target bundleno = 268 (0x10c), region = 68  ;;  %434 = vst [vmem:[#allocation2] sm:$0xff] (!%p1552_p7), %v2320_v1  ;;  %435 = vst [vmem:[#allocation2 + $0x8] sm:$0xff] (!%p1552_p7), %v2320_v1 }
 0x10c PF: > { %v1864_v2 = vld [vmem:[%s2744_s21 + $0x40] sm:$0xff]   ;;  %v1866_v4 = vld [vmem:[%s2744_s21 + $0x48] sm:$0xff]   ;;  %v1868_v6 = vld [vmem:[%s2744_s21 + $0x50] sm:$0xff]   ;;  %s3037_s0 = sld [smem:[#allocation22_spill]] }
 0x10d   : > { %v1865_v3 = vld [vmem:[%s2744_s21] sm:$0xff]   ;;  %1652 = vmatprep.subr.bf16.mxu0 %v1864_v2  ;;  %v1867_v5 = vld [vmem:[%s2744_s21 + $0x8] sm:$0xff]   ;;  %v1869_v7 = vld [vmem:[%s2744_s21 + $0x10] sm:$0xff]  }
 0x10e   : > { %1653 = vmatpush3.bf16.msra.mxu0 %v1865_v3  ;;  %v1870_v8 = vld [vmem:[%s2744_s21 + $0x58] sm:$0xff]   ;;  %v1872_v10 = vld [vmem:[%s2744_s21 + $0x60] sm:$0xff]   ;;  %v1874_v12 = vld [vmem:[%s2744_s21 + $0x68] sm:$0xff]  }
 0x10f   : > { %1654 = vmatprep.subr.bf16.mxu0 %v1866_v4  ;;  %v1871_v9 = vld [vmem:[%s2744_s21 + $0x18] sm:$0xff]   ;;  %v1873_v11 = vld [vmem:[%s2744_s21 + $0x20] sm:$0xff]   ;;  %v1875_v14 = vld [vmem:[%s2744_s21 + $0x28] sm:$0xff]  }
 0x110   : > { %v1882_v13 = vld [vmem:[%s340_s12 + $0x4] ss:$8 sps:$4 sm:$0xff]   ;;  %v1880_v19 = vld [vmem:[%s340_s12] ss:$8 sps:$4 sm:$0xff]  }
 0x111   : > { %610 = vmatprep.mubr.bf16.mxu0 %v1882_v13  ;;  %v1876_v15 = vld [vmem:[%s2744_s21 + $0x70] sm:$0xff]   ;;  %v1878_v17 = vld [vmem:[%s2744_s21 + $0x78] sm:$0xff]  }
 0x112   : > { %1655 = vmatpush3.bf16.msra.mxu0 %v1867_v5  ;;  %v1877_v16 = vld [vmem:[%s2744_s21 + $0x30] sm:$0xff]   ;;  %v1879_v18 = vld [vmem:[%s2744_s21 + $0x38] sm:$0xff]   ;;  %p1571_p3 = scmp.ne.s32.totalorder %s3037_s0, 2 }
 0x113   : > { %1656 = vmatprep.subr.bf16.mxu0 %v1868_v6  ;;  %v436_v21 = vld [vmem:[#allocation2] sm:$0xff]  ;;  %v437_v25 = vld [vmem:[#allocation2 + $0x8] sm:$0xff]  ;;  %v2321_v3 = vmov (!%p1571_p3), 0   ;;  %vm2323_vm0 = vmmov (!%p1571_p3), 0  }
 0x114   : > { %v1883_v33 = vld [vmem:[%s2757_s10 + $0x4] ss:$16 sps:$4 sm:$0xff] (!%p1571_p3)   ;;  %v1885_v34 = vld [vmem:[%s2757_s10 + $0xc] ss:$16 sps:$4 sm:$0xff] (!%p1571_p3)   ;;  %v1887_v35 = vld [vmem:[%s2757_s10] ss:$16 sps:$4 sm:$0xff] (!%p1571_p3)   ;;  %909 = vmatprep.mubr.bf16.mxu1 (!%p1571_p3), %v2321_v3 }
 0x115   : > { %v1888_v37 = vld [vmem:[%s2757_s10 + $0x8] ss:$16 sps:$4 sm:$0xff] (!%p1571_p3)   ;;  %877 = vmatprep.subr.bf16.mxu1 (!%p1571_p3), %v1885_v34  ;;  %v1889_v38 = vld [vmem:[%s2757_s10 + $0x24] ss:$16 sps:$4 sm:$0xff] (!%p1571_p3)   ;;  %v1891_v39 = vld [vmem:[%s2757_s10 + $0x2c] ss:$16 sps:$4 sm:$0xff] (!%p1571_p3)  }
 0x116   : > { %1657 = vmatpush3.bf16.msra.mxu0 %v1869_v7  ;;  %878 = vmatpush1.bf16.msra.mxu1 (!%p1571_p3), %v1888_v37  ;;  %v1893_v40 = vld [vmem:[%s2757_s10 + $0x20] ss:$16 sps:$4 sm:$0xff] (!%p1571_p3)   ;;  %v1894_v41 = vld [vmem:[%s2757_s10 + $0x28] ss:$16 sps:$4 sm:$0xff] (!%p1571_p3)   ;;  %v1895_v42 = vld [vmem:[%s2757_s10 + $0x44] ss:$16 sps:$4 sm:$0xff] (!%p1571_p3)  }
 0x117   : > { %1658 = vmatprep.subr.bf16.mxu0 %v1870_v8  ;;  %879 = vmatprep.subr.bf16.mxu1 (!%p1571_p3), %v1891_v39  ;;  %v1897_v43 = vld [vmem:[%s2757_s10 + $0x4c] ss:$16 sps:$4 sm:$0xff] (!%p1571_p3)   ;;  %v1899_v44 = vld [vmem:[%s2757_s10 + $0x40] ss:$16 sps:$4 sm:$0xff] (!%p1571_p3)   ;;  %v1900_v45 = vld [vmem:[%s2757_s10 + $0x48] ss:$16 sps:$4 sm:$0xff] (!%p1571_p3)  }
 0x118   : > { %v1901_v46 = vld [vmem:[%s2757_s10 + $0x64] ss:$16 sps:$4 sm:$0xff] (!%p1571_p3)   ;;  %v1903_v47 = vld [vmem:[%s2757_s10 + $0x6c] ss:$16 sps:$4 sm:$0xff] (!%p1571_p3)   ;;  %v1905_v48 = vld [vmem:[%s2757_s10 + $0x60] ss:$16 sps:$4 sm:$0xff] (!%p1571_p3)  }
 0x119   : > { %v1906_v49 = vld [vmem:[%s2757_s10 + $0x68] ss:$16 sps:$4 sm:$0xff] (!%p1571_p3)   ;;  %v1907_v50 = vld [vmem:[%s2757_s10 + $0x84] ss:$16 sps:$4 sm:$0xff] (!%p1571_p3)   ;;  %v1909_v51 = vld [vmem:[%s2757_s10 + $0x8c] ss:$16 sps:$4 sm:$0xff] (!%p1571_p3)  }
 0x11a   : > { %1659 = vmatpush3.bf16.msra.mxu0 %v1871_v9  ;;  %880 = vmatpush1.bf16.msra.mxu1 (!%p1571_p3), %v1894_v41  ;;  %v1911_v52 = vld [vmem:[%s2757_s10 + $0x80] ss:$16 sps:$4 sm:$0xff] (!%p1571_p3)   ;;  %v1912_v53 = vld [vmem:[%s2757_s10 + $0x88] ss:$16 sps:$4 sm:$0xff] (!%p1571_p3)   ;;  %v1913_v54 = vld [vmem:[%s2757_s10 + $0xa4] ss:$16 sps:$4 sm:$0xff] (!%p1571_p3)  }
 0x11b   : > { %1660 = vmatprep.subr.bf16.mxu0 %v1872_v10  ;;  %881 = vmatprep.subr.bf16.mxu1 (!%p1571_p3), %v1897_v43  ;;  %v1915_v55 = vld [vmem:[%s2757_s10 + $0xac] ss:$16 sps:$4 sm:$0xff] (!%p1571_p3)   ;;  %v1917_v56 = vld [vmem:[%s2757_s10 + $0xa0] ss:$16 sps:$4 sm:$0xff] (!%p1571_p3)   ;;  %v1918_v57 = vld [vmem:[%s2757_s10 + $0xa8] ss:$16 sps:$4 sm:$0xff] (!%p1571_p3)  }
 0x11c   : > { %v1919_v58 = vld [vmem:[%s2757_s10 + $0xc4] ss:$16 sps:$4 sm:$0xff] (!%p1571_p3)   ;;  %v1921_v59 = vld [vmem:[%s2757_s10 + $0xcc] ss:$16 sps:$4 sm:$0xff] (!%p1571_p3)   ;;  %v1923_v60 = vld [vmem:[%s2757_s10 + $0xc0] ss:$16 sps:$4 sm:$0xff] (!%p1571_p3)  }
 0x11d   : > { %v1924_v61 = vld [vmem:[%s2757_s10 + $0xc8] ss:$16 sps:$4 sm:$0xff] (!%p1571_p3)   ;;  %v1925_v62 = vld [vmem:[%s2757_s10 + $0xe4] ss:$16 sps:$4 sm:$0xff] (!%p1571_p3)   ;;  %v1927_v63 = vld [vmem:[%s2757_s10 + $0xec] ss:$16 sps:$4 sm:$0xff] (!%p1571_p3)  }
 0x11e   : > { %1661 = vmatpush3.bf16.msra.mxu0 %v1873_v11  ;;  %882 = vmatpush1.bf16.msra.mxu1 (!%p1571_p3), %v1900_v45  ;;  %v1929_v0 = vld [vmem:[%s2757_s10 + $0xe0] ss:$16 sps:$4 sm:$0xff] (!%p1571_p3)   ;;  %v1930_v1 = vld [vmem:[%s2757_s10 + $0xe8] ss:$16 sps:$4 sm:$0xff] (!%p1571_p3)   ;;  %v1933_v2 = vld [vmem:[%s2765_s15 + $0x4] ss:$16 sps:$4 sm:$0xff] (!%p1571_p3)  }
 0x11f   : > { %1662 = vmatprep.subr.bf16.mxu0 %v1874_v12  ;;  %883 = vmatprep.subr.bf16.mxu1 (!%p1571_p3), %v1903_v47  ;;  %v1936_v4 = vld [vmem:[%s2765_s15 + $0xc] ss:$16 sps:$4 sm:$0xff] (!%p1571_p3)   ;;  %v1931_v13 = vld [vmem:[%s2765_s15] ss:$16 sps:$4 sm:$0xff] (!%p1571_p3)   ;;  %v1970_v39 = vld [vmem:[%s2765_s15 + $0xc8] ss:$16 sps:$4 sm:$0xff] (!%p1571_p3)  }
 0x120   : > { %v1961_v34 = vld [vmem:[%s2765_s15 + $0xa0] ss:$16 sps:$4 sm:$0xff] (!%p1571_p3)   ;;  %v1972_v37 = vld [vmem:[%s2765_s15 + $0xcc] ss:$16 sps:$4 sm:$0xff] (!%p1571_p3)   ;;  %v1976_v43 = vld [vmem:[%s2765_s15 + $0xe8] ss:$16 sps:$4 sm:$0xff] (!%p1571_p3)  }
 0x121   : > { %v1978_v41 = vld [vmem:[%s2765_s15 + $0xec] ss:$16 sps:$4 sm:$0xff] (!%p1571_p3)   ;;  %v2322_v45 = vmov (!%p1571_p3), 0.0   ;;  %v1981_v47 = vld [vmem:[%s2751_s8 + $0x10] sm:$0xff] (!%p1571_p3)  }
 0x122   : > { %1663 = vmatpush3.bf16.msra.mxu0 %v1875_v14  ;;  %884 = vmatpush1.bf16.msra.mxu1 (!%p1571_p3), %v1906_v49  ;;  %v1934_v14 = vld [vmem:[%s2765_s15 + $0x8] ss:$16 sps:$4 sm:$0xff] (!%p1571_p3)   ;;  %v1983_v49 = vld [vmem:[%s2751_s8 + $0x20] sm:$0xff] (!%p1571_p3)  }
 0x123   : > { %1664 = vmatprep.subr.bf16.mxu0 %v1876_v15  ;;  %885 = vmatprep.subr.bf16.mxu1 (!%p1571_p3), %v1909_v51  ;;  %v1985_v51 = vld [vmem:[%s2751_s8 + $0x30] sm:$0xff] (!%p1571_p3)  }
 0x126   : > { %1665 = vmatpush3.bf16.msra.mxu0 %v1877_v16  ;;  %886 = vmatpush1.bf16.msra.mxu1 (!%p1571_p3), %v1912_v53  ;;  %v1939_v16 = vld [vmem:[%s2765_s15 + $0x24] ss:$16 sps:$4 sm:$0xff] (!%p1571_p3)  }
 0x127   : > { %1666 = vmatprep.subr.bf16.mxu0 %v1878_v17  ;;  %887 = vmatprep.subr.bf16.mxu1 (!%p1571_p3), %v1915_v55  ;;  %v1942_v17 = vld [vmem:[%s2765_s15 + $0x2c] ss:$16 sps:$4 sm:$0xff] (!%p1571_p3)  }
 0x12a   : > { %1667 = vmatpush3.bf16.msra.mxu0 %v1879_v18  ;;  %888 = vmatpush1.bf16.msra.mxu1 (!%p1571_p3), %v1918_v57  ;;  %v1937_v18 = vld [vmem:[%s2765_s15 + $0x20] ss:$16 sps:$4 sm:$0xff] (!%p1571_p3)  }
 0x12b   : > { %834 = vmatprep.subr.bf16.mxu0 (!%p1571_p3), %v1883_v33  ;;  %889 = vmatprep.subr.bf16.mxu1 (!%p1571_p3), %v1921_v59  ;;  %v1966_v33 = vld [vmem:[%s2765_s15 + $0xac] ss:$16 sps:$4 sm:$0xff] (!%p1571_p3)  }
 0x12d   : > { %611 = vmatmul.mubr.bf16.vlgmr.msra.gmra.mrb[0].mxu0 %v1880_v19  ;;  %v1940_v19 = vld [vmem:[%s2765_s15 + $0x28] ss:$16 sps:$4 sm:$0xff] (!%p1571_p3)  }
 0x12e   : > { %835 = vmatpush1.bf16.msra.mxu0 (!%p1571_p3), %v1887_v35  ;;  %890 = vmatpush1.bf16.msra.mxu1 (!%p1571_p3), %v1924_v61  ;;  %v1964_v35 = vld [vmem:[%s2765_s15 + $0xa8] ss:$16 sps:$4 sm:$0xff] (!%p1571_p3)  }
 0x12f   : > { %836 = vmatprep.subr.bf16.mxu0 (!%p1571_p3), %v1889_v38  ;;  %891 = vmatprep.subr.bf16.mxu1 (!%p1571_p3), %v1927_v63  ;;  %v1967_v38 = vld [vmem:[%s2765_s15 + $0xc0] ss:$16 sps:$4 sm:$0xff] (!%p1571_p3)  }
 0x130   : > { %866 = vmatprep.mubr.bf16.mxu0 (!%p1571_p3), %v2321_v3 }
 0x132   : > { %837 = vmatpush1.bf16.msra.mxu0 (!%p1571_p3), %v1893_v40  ;;  %892 = vmatpush1.bf16.msra.mxu1 (!%p1571_p3), %v1930_v1  ;;  %v1975_v40 = vld [vmem:[%s2765_s15 + $0xe4] ss:$16 sps:$4 sm:$0xff] (!%p1571_p3)  }
 0x133   : > { %838 = vmatprep.subr.bf16.mxu0 (!%p1571_p3), %v1895_v42  ;;  %1155 = vmatprep.subr.bf16.mxu1 (!%p1571_p3), %v1936_v4  ;;  %v1973_v42 = vld [vmem:[%s2765_s15 + $0xe0] ss:$16 sps:$4 sm:$0xff] (!%p1571_p3)  }
 0x136   : > { %839 = vmatpush1.bf16.msra.mxu0 (!%p1571_p3), %v1899_v44  ;;  %v1979_v44 = vld [vmem:[%s2751_s8] sm:$0xff] (!%p1571_p3)  }
 0x137   : > { %840 = vmatprep.subr.bf16.mxu0 (!%p1571_p3), %v1901_v46  ;;  %v1980_v46 = vld [vmem:[%s2751_s8 + $0x8] sm:$0xff] (!%p1571_p3)  }
 0x13a   : > { %841 = vmatpush1.bf16.msra.mxu0 (!%p1571_p3), %v1905_v48  ;;  %v1982_v48 = vld [vmem:[%s2751_s8 + $0x18] sm:$0xff] (!%p1571_p3)  }
 0x13b   : > { %842 = vmatprep.subr.bf16.mxu0 (!%p1571_p3), %v1907_v50  ;;  %v1984_v50 = vld [vmem:[%s2751_s8 + $0x28] sm:$0xff] (!%p1571_p3)  }
 0x13e   : > { %843 = vmatpush1.bf16.msra.mxu0 (!%p1571_p3), %v1911_v52  ;;  %v1986_v52 = vld [vmem:[%s2751_s8 + $0x38] sm:$0xff] (!%p1571_p3)  }
 0x13f   : > { %844 = vmatprep.subr.bf16.mxu0 (!%p1571_p3), %v1913_v54 }
 0x142   : > { %845 = vmatpush1.bf16.msra.mxu0 (!%p1571_p3), %v1917_v56 }
 0x143   : > { %846 = vmatprep.subr.bf16.mxu0 (!%p1571_p3), %v1919_v58 }
 0x146   : > { %847 = vmatpush1.bf16.msra.mxu0 (!%p1571_p3), %v1923_v60 }
 0x147   : > { %848 = vmatprep.subr.bf16.mxu0 (!%p1571_p3), %v1925_v62 }
 0x14a   : > { %849 = vmatpush1.bf16.msra.mxu0 (!%p1571_p3), %v1929_v0 }
 0x14b   : > { %1112 = vmatprep.subr.bf16.mxu0 (!%p1571_p3), %v1933_v2 }
 0x200   : > { %v1668_v20 = vpop.f32.mrb[0].mxu0 }
 0x201   : > { %v1669_v22 = vpop.f32.mrb[1].mxu0 }
 0x202   : > { %v1670_v23 = vadd.f32 %v1669_v22, %v1668_v20  ;;  %v1671_v24 = vpop.f32.mrb[2].mxu0  ;;  %626 = sbr.rel (%p1571_p3) target bundleno = 989 (0x3dd), region = 72  ;;  %v1945_v20 = vld [vmem:[%s2765_s15 + $0x44] ss:$16 sps:$4 sm:$0xff] (!%p1571_p3)   ;;  %v1943_v22 = vld [vmem:[%s2765_s15 + $0x40] ss:$16 sps:$4 sm:$0xff] (!%p1571_p3)  }
 0x203   : > { %v1672_v26 = vpop.f32.mrb[3].mxu0 }
 0x204   : > { %v619_v27 = vadd.f32 %v1670_v23, %v436_v21  ;;  %v1673_v28 = vadd.f32 %v1672_v26, %v1671_v24  ;;  %v1948_v21 = vld [vmem:[%s2765_s15 + $0x4c] ss:$16 sps:$4 sm:$0xff] (!%p1571_p3)   ;;  %v1946_v23 = vld [vmem:[%s2765_s15 + $0x48] ss:$16 sps:$4 sm:$0xff] (!%p1571_p3)   ;;  %v1951_v24 = vld [vmem:[%s2765_s15 + $0x64] ss:$16 sps:$4 sm:$0xff] (!%p1571_p3)  }
 0x205   : > { %v1949_v26 = vld [vmem:[%s2765_s15 + $0x60] ss:$16 sps:$4 sm:$0xff] (!%p1571_p3)  }
 0x206   : > { %621 = vst [vmem:[#allocation2] sm:$0xff] %v619_v27  ;;  %v620_v29 = vadd.f32 %v1673_v28, %v437_v25  ;;  %v1954_v25 = vld [vmem:[%s2765_s15 + $0x6c] ss:$16 sps:$4 sm:$0xff] (!%p1571_p3)   ;;  %v1952_v27 = vld [vmem:[%s2765_s15 + $0x68] ss:$16 sps:$4 sm:$0xff] (!%p1571_p3)  }
 0x207   : > { %v1957_v28 = vld [vmem:[%s2765_s15 + $0x84] ss:$16 sps:$4 sm:$0xff] (!%p1571_p3)  }
 0x208   : > { %622 = vst [vmem:[#allocation2 + $0x8] sm:$0xff] %v620_v29  ;;  %v1960_v29 = vld [vmem:[%s2765_s15 + $0x8c] ss:$16 sps:$4 sm:$0xff] (!%p1571_p3)  }
 0x20d   : > { %v2789_v30 = vld [vmem:[#allocation2] sm:$0xff] }
 0x20e   : > { %v629_v32 = vmul.f32 %v2789_v30, %v2789_v30 }
 0x20f   : > { %v2791_v31 = vld [vmem:[#allocation2 + $0x8] sm:$0xff] }
 0x210   : > { %631 = vadd.xlane.f32.xlu0 %v629_v32  ;;  %v630_v36 = vmul.f32 %v2791_v31, %v2791_v31  ;;  %v1963_v32 = vld [vmem:[%s2765_s15 + $0xa4] ss:$16 sps:$4 sm:$0xff]  }
 0x214   : > { %633 = vadd.xlane.f32.xlu0 %v630_v36  ;;  %v1969_v36 = vld [vmem:[%s2765_s15 + $0xc4] ss:$16 sps:$4 sm:$0xff]  }
 0x29d   : > { %v632_v5 = vpop.xlane.xlu0 %631 }
 0x29e   : > { %v635_v6 = vmax.f32 %v632_v5, 1e-24 }
 0x2a0   : > { %1987 = vrsqrt.f32 %v635_v6 }
 0x2a1   : > { %v634_v7 = vpop.xlane.xlu0 %633 }
 0x2a2   : > { %v636_v8 = vmax.f32 %v634_v7, 1e-24 }
 0x2a4   : > { %1989 = vrsqrt.f32 %v636_v8 }
 0x2aa   : > { %v1988_v9 = vpop.eup %1987 }
 0x2ab   : > { %v639_v11 = vmul.f32 %v1988_v9, %v2789_v30  ;;  %v1955_v30 = vld [vmem:[%s2765_s15 + $0x80] ss:$16 sps:$4 sm:$0xff]  }
 0x2ae   : > { %v1990_v10 = vpop.eup %1989 }
 0x2af   : > { %v640_v12 = vmul.f32 %v1990_v10, %v2791_v31  ;;  %v1958_v31 = vld [vmem:[%s2765_s15 + $0x88] ss:$16 sps:$4 sm:$0xff]  }
 0x2b1   : > { %v2835_v15 = vpack.c.bf16 %v640_v12, %v639_v11 }
 0x2b3   : > { %867 = vmatmul.mubr.bf16.vlgmr.msra.gmra.mrb[0].mxu0 %v2835_v15  ;;  %910 = vmatmul.mubr.bf16.vlgmr.msra.gmra.mrb[0].mxu1 %v2835_v15 }
 0x2b4   : > { %1113 = vmatpush1.bf16.msra.mxu0 %v1931_v13  ;;  %1156 = vmatpush1.bf16.msra.mxu1 %v1934_v14 }
 0x2b5   : > { %1114 = vmatprep.subr.bf16.mxu0 %v1939_v16  ;;  %1157 = vmatprep.subr.bf16.mxu1 %v1942_v17 }
 0x2b6   : > { %1144 = vmatprep.mubr.bf16.mxu0 %v2321_v3  ;;  %1187 = vmatprep.mubr.bf16.mxu1 %v2321_v3 }
 0x2b8   : > { %1115 = vmatpush1.bf16.msra.mxu0 %v1937_v18  ;;  %1158 = vmatpush1.bf16.msra.mxu1 %v1940_v19 }
 0x2b9   : > { %1116 = vmatprep.subr.bf16.mxu0 %v1945_v20  ;;  %1159 = vmatprep.subr.bf16.mxu1 %v1948_v21 }
 0x2bc   : > { %1117 = vmatpush1.bf16.msra.mxu0 %v1943_v22  ;;  %1160 = vmatpush1.bf16.msra.mxu1 %v1946_v23 }
 0x2bd   : > { %1118 = vmatprep.subr.bf16.mxu0 %v1951_v24  ;;  %1161 = vmatprep.subr.bf16.mxu1 %v1954_v25 }
 0x2c0   : > { %1119 = vmatpush1.bf16.msra.mxu0 %v1949_v26  ;;  %1162 = vmatpush1.bf16.msra.mxu1 %v1952_v27 }
 0x2c1   : > { %1120 = vmatprep.subr.bf16.mxu0 %v1957_v28  ;;  %1163 = vmatprep.subr.bf16.mxu1 %v1960_v29 }
 0x2c4   : > { %1121 = vmatpush1.bf16.msra.mxu0 %v1955_v30  ;;  %1164 = vmatpush1.bf16.msra.mxu1 %v1958_v31 }
 0x2c5   : > { %1122 = vmatprep.subr.bf16.mxu0 %v1963_v32  ;;  %1165 = vmatprep.subr.bf16.mxu1 %v1966_v33 }
 0x2c8   : > { %1123 = vmatpush1.bf16.msra.mxu0 %v1961_v34  ;;  %1166 = vmatpush1.bf16.msra.mxu1 %v1964_v35 }
 0x2c9   : > { %1124 = vmatprep.subr.bf16.mxu0 %v1969_v36  ;;  %1167 = vmatprep.subr.bf16.mxu1 %v1972_v37 }
 0x2cc   : > { %1125 = vmatpush1.bf16.msra.mxu0 %v1967_v38  ;;  %1168 = vmatpush1.bf16.msra.mxu1 %v1970_v39 }
 0x2cd   : > { %1126 = vmatprep.subr.bf16.mxu0 %v1975_v40  ;;  %1169 = vmatprep.subr.bf16.mxu1 %v1978_v41 }
 0x2d0   : > { %1127 = vmatpush1.bf16.msra.mxu0 %v1973_v42  ;;  %1170 = vmatpush1.bf16.msra.mxu1 %v1976_v43 }
 0x2d1   : > { %1683 = vmatprep.subr.bf16.mxu0 %v2322_v45 }
 0x2d3   : > { %1145 = vmatmul.mubr.bf16.vlgmr.msra.gmra.mrb[4].mxu0 %v2835_v15  ;;  %1188 = vmatmul.mubr.bf16.vlgmr.msra.gmra.mrb[4].mxu1 %v2835_v15 }
 0x2d4   : > { %1684 = vmatpush3.bf16.msra.mxu0 %v1979_v44  ;;  %1699 = vmatprep.mubr.msk.bf16.mxu0 %vm2323_vm0, %v2322_v45 }
 0x2d5   : > { %1685 = vmatprep.subr.bf16.mxu0 %v2322_v45 }
 0x2d8   : > { %1686 = vmatpush3.bf16.msra.mxu0 %v1980_v46 }
 0x2d9   : > { %1687 = vmatprep.subr.bf16.mxu0 %v2322_v45 }
 0x2dc   : > { %1688 = vmatpush3.bf16.msra.mxu0 %v1981_v47 }
 0x2dd   : > { %1689 = vmatprep.subr.bf16.mxu0 %v2322_v45 }
 0x2e0   : > { %1690 = vmatpush3.bf16.msra.mxu0 %v1982_v48  ;;  %v1343_v48 = vld [vmem:[#allocation12] sm:$0xff] }
 0x2e1   : > { %1691 = vmatprep.subr.bf16.mxu0 %v2322_v45 }
 0x2e4   : > { %1692 = vmatpush3.bf16.msra.mxu0 %v1983_v49 }
 0x2e5   : > { %1693 = vmatprep.subr.bf16.mxu0 %v2322_v45 }
 0x2e8   : > { %1694 = vmatpush3.bf16.msra.mxu0 %v1984_v50 }
 0x2e9   : > { %1695 = vmatprep.subr.bf16.mxu0 %v2322_v45 }
 0x2ec   : > { %1696 = vmatpush3.bf16.msra.mxu0 %v1985_v51 }
 0x2ed   : > { %1697 = vmatprep.subr.bf16.mxu0 %v2322_v45 }
 0x2f0   : > { %1698 = vmatpush3.bf16.msra.mxu0 %v1986_v52 }
 0x2f3   : > { %1700 = vmatmul.mubr.bf16.vlgmr.msra.gmra.mrb[8].mxu0 %v2835_v15 }
 0x386   : > { %v868_v53 = vpop.f32.mrb[0].mxu0  ;;  %v911_v54 = vpop.f32.mrb[0].mxu1 }
 0x387   : > { %v870_v55 = vpop.f32.mrb[1].mxu0  ;;  %v913_v56 = vpop.f32.mrb[1].mxu1 }
 0x388   : > { %v872_v57 = vpop.f32.mrb[2].mxu0  ;;  %v915_v58 = vpop.f32.mrb[2].mxu1 }
 0x389   : > { %v874_v59 = vpop.f32.mrb[3].mxu0  ;;  %v917_v60 = vpop.f32.mrb[3].mxu1 }
 0x3a6   : > { %v1146_v61 = vpop.f32.mrb[4].mxu0  ;;  %v1189_v62 = vpop.f32.mrb[4].mxu1 }
 0x3a7   : > { %v1198_v63 = vmul.f32 %v1146_v61, %v868_v53  ;;  %v1200_v0 = vmul.f32 %v1189_v62, %v911_v54  ;;  %v1148_v1 = vpop.f32.mrb[5].mxu0  ;;  %v1191_v2 = vpop.f32.mrb[5].mxu1  ;;  %v1344_v54 = vld [vmem:[#allocation12 + $0x8] sm:$0xff] }
 0x3a8   : > { %v1199_v3 = vmul.f32 %v1148_v1, %v870_v55  ;;  %v1201_v4 = vmul.f32 %v1191_v2, %v913_v56  ;;  %v1150_v5 = vpop.f32.mrb[6].mxu0  ;;  %v1193_v6 = vpop.f32.mrb[6].mxu1 }
 0x3a9   : > { %v1202_v7 = vmul.f32 %v1150_v5, %v872_v57  ;;  %v1204_v8 = vmul.f32 %v1193_v6, %v915_v58  ;;  %v1152_v9 = vpop.f32.mrb[7].mxu0  ;;  %v1195_v10 = vpop.f32.mrb[7].mxu1 }
 0x3aa   : > { %v1206_v11 = vadd.f32 %v1199_v3, %v1198_v63  ;;  %v1203_v12 = vmul.f32 %v1152_v9, %v874_v59  ;;  %v1205_v13 = vmul.f32 %v1195_v10, %v917_v60 }
 0x3ac   : > { %v1208_v14 = vadd.f32 %v1206_v11, %v1200_v0  ;;  %v1207_v15 = vadd.f32 %v1203_v12, %v1202_v7 }
 0x3ae   : > { %v1210_v16 = vadd.f32 %v1208_v14, %v1201_v4  ;;  %v1209_v17 = vadd.f32 %v1207_v15, %v1204_v8 }
 0x3b0   : > { %v1212_v18 = vmax.f32 %v1210_v16, 0.0  ;;  %v1211_v19 = vadd.f32 %v1209_v17, %v1205_v13 }
 0x3b2   : > { %1991 = vrsqrt.f32 %v1212_v18  ;;  %v1213_v20 = vmax.f32 %v1211_v19, 0.0  ;;  %vm1216_vm1 = vcmp.eq.f32.partialorder %v1212_v18, inf  ;;  %v1219_v23 = vand.u32 2147483648, %v1212_v18 }
 0x3b3   : > { %vm1218_vm2 = vcmp.eq.f32.partialorder %v1212_v18, 0.0 }
 0x3b4   : > { %1993 = vrsqrt.f32 %v1213_v20  ;;  %vm1223_vm3 = vcmp.eq.f32.partialorder %v1213_v20, inf  ;;  %v1226_v29 = vand.u32 2147483648, %v1213_v20  ;;  %vm1225_vm4 = vcmp.eq.f32.partialorder %v1213_v20, 0.0 }
 0x3bc   : > { %v1992_v21 = vpop.eup %1991 }
 0x3bd   : > { %v1215_v22 = vmul.f32 %v1992_v21, %v1212_v18 }
 0x3be   : > { %v1994_v24 = vpop.eup %1993 }
 0x3bf   : > { %v1217_v25 = vsel %vm1216_vm1, %v1212_v18, %v1215_v22  ;;  %v1222_v27 = vmul.f32 %v1994_v24, %v1213_v20 }
 0x3c0   : > { %v1220_v26 = vsel %vm1218_vm2, %v1219_v23, %v1217_v25 }
 0x3c1   : > { %v1228_v28 = vmax.f32 %v1220_v26, 1e-07  ;;  %v1224_v30 = vsel %vm1223_vm3, %v1213_v20, %v1222_v27 }
 0x3c2   : > { %v1227_v31 = vsel %vm1225_vm4, %v1226_v29, %v1224_v30 }
 0x3c3   : > { %1995 = vrcp.f32 %v1228_v28  ;;  %v1229_v32 = vmax.f32 %v1227_v31, 1e-07 }
 0x3c5   : > { %1997 = vrcp.f32 %v1229_v32 }
 0x3c6   : > { %v1334_v33 = vpop.f32.mrb[8].mxu0 }
 0x3c7   : > { %v1701_v34 = vpop.f32.mrb[9].mxu0  ;;  %v1341_v39 = vmul.f32 14.285714, %v1334_v33 }
 0x3c8   : > { %v1337_v35 = vpop.f32.mrb[10].mxu0 }
 0x3c9   : > { %v1702_v36 = vpop.f32.mrb[11].mxu0  ;;  %v1342_v43 = vmul.f32 14.285714, %v1337_v35  ;;  %v1347_v45 = vmul.f32 0.3, %v1341_v39 }
 0x3cb   : > { %v1348_v50 = vmul.f32 0.3, %v1342_v43 }
 0x3cd   : > { %v1996_v37 = vpop.eup %1995 }
 0x3ce   : > { %v1232_v38 = vmul.f32 %v1996_v37, %v1210_v16 }
 0x3cf   : > { %v1998_v40 = vpop.eup %1997 }
 0x3d0   : > { %v1234_v41 = vmul.f32 14.285714, %v1232_v38  ;;  %v1233_v42 = vmul.f32 %v1998_v40, %v1211_v19 }
 0x3d2   : > { %v1345_v44 = vmul.f32 0.7, %v1234_v41  ;;  %v1235_v46 = vmul.f32 14.285714, %v1233_v42 }
 0x3d4   : > { %v1349_v47 = vadd.f32 %v1347_v45, %v1345_v44  ;;  %v1346_v49 = vmul.f32 0.7, %v1235_v46 }
 0x3d6   : > { %v1351_v51 = vmul.f32 0.5, %v1349_v47  ;;  %v1350_v52 = vadd.f32 %v1348_v50, %v1346_v49 }
 0x3d8   : > { %v1353_v53 = vadd.f32 %v1351_v51, %v1343_v48  ;;  %v1352_v55 = vmul.f32 0.5, %v1350_v52 }
 0x3da   : > { %1355 = vst [vmem:[#allocation12] sm:$0xff] %v1353_v53  ;;  %v1354_v56 = vadd.f32 %v1352_v55, %v1344_v54 }
 0x3dc   : > { %1356 = vst [vmem:[#allocation12 + $0x8] sm:$0xff] %v1354_v56 }
 0x3dd PF: > { %p1735_p4 = scmp.eq.s32.totalorder %s2426_s7, 5  ;;  %s2324_s20 = smov [#allocation12]  }
 0x3de   : > { %s1366_s12 = sshll.u32 %s2324_s20, 4  ;;  %s1367_s12 = int_to_ptr.vmem [resolvable:$true] %s1366_s12 }
 0x3df   : > { %s2149_s14 = scalar_lea.vmem %s1367_s12, 256  ;;  %p2156_p2 = scmp.lt.s32.totalorder %s1367_s12, %s1367_s12 }
 0x3e0   : > { %p2150_p8 = scmp.ne.s32.totalorder %s1367_s12, %s2149_s14  ;;  %p2157_p1 = scmp.lt.s32.totalorder %s2149_s14, %s2149_s14 }
 0x3e2   : > { %p2151_p10 = pnand %p2150_p8, %p1735_p4  ;;  %p2158_p13 = por %p2157_p1, %p2156_p2 }
 0x3e4   : > { %p2152_p12 = pneg %p2151_p10 }
 0x3e6   : > { %p2159_p0 = pnand %p2158_p13, %p2152_p12 }
 0x3e8   : > { %2162 = shalt.err (!%p2159_p0)
}
 0x3e9   : > { %s3038_s27 = sld [smem:[#allocation34_spill]] }
 0x3ef   : > { %s3039_s13 = smov %s3038_s27  ;;  %s2163_s19 = scalar_lea.hbm %s3038_s27, 256 }
 0x3f0   : > { %p2164_p5 = scmp.ne.s32.totalorder %s3039_s13, %s2163_s19  ;;  %p2169_p11 = scmp.lt.u32.totalorder %s2163_s19, %s3039_s13 }
 0x3f2   : > { %p2165_p9 = pnand %p2164_p5, %p1735_p4 }
 0x3f4   : > { %p2166_p6 = pneg %p2165_p9 }
 0x3f6   : > { %p2171_p7 = pnand %p2169_p11, %p2166_p6 }
 0x3f8   : > { %2174 = shalt.err (!%p2171_p7)
}
 0x3f9   : > { %s2325_s28 = smov 128   ;;  %s2326_s8 = smov 8  }
 0x3fa   : > { %1715 = dma.vmem_to_hbm [thread:$0]  (%p1735_p4), %s1367_s12, 256, %s3039_s13, [#allocation5], %s2325_s28, %s2325_s28, %s2326_s8  }
 0x3fb   : > { %2248 = dma.done.wait (%p1735_p4), [#allocation5], 256  }
 0x3fc   : > { %2250 = vsyncadd (%p1735_p4), [#allocation5], 4294967040 }
 0x3fd PF: > { %s25_s6 = sadd.s32 1, %s2305_s6   ;;  %s3041_s18 = sld [smem:[#allocation18_spill]] }
 0x3fe   : > { %p2902_p3 = scmp.ge.s32.totalorder %s25_s6, 8   ;;  %s3042_s19 = sld [smem:[#allocation19_spill]] }
 0x3ff   : > { %s3043_s20 = sld [smem:[#allocation29_spill]]  ;;  %s3044_s21 = sld [smem:[#allocation20_spill]] }
 0x400   : > { %s3045_s5 = sld [smem:[#allocation21_spill]]  ;;  %s3046_s23 = sld [smem:[#allocation27_spill]] }
 0x401   : > { %s3047_s15 = smov %s2616_s22  ;;  %s3048_s7 = sld [smem:[#allocation24_spill]] }
 0x402   : > { %s3049_s17 = sld [smem:[#allocation25_spill]]  ;;  %s3051_s24 = smov %s2281_s25 }
 0x403   : > { %s3052_s25 = smov %s2285_s26  ;;  %s3053_s26 = smov %s3047_s15 }
 0x404   : > { %s3054_s27 = smov %s2297_s29  ;;  %s3055_s28 = smov %s2301_s30 }
 0x405   :  { %24 = sbr.rel (!%p2902_p3) target bundleno = 18 (0x12), region = 138 }
 0x406   : > { %s3050_s22 = smov %s3045_s5 }
 0x407   : > { %s3056_s29 = smov %s3048_s7 }
 0x408   : > { %s3057_s30 = smov %s3049_s17 }
 0x40c   :  { %1382 = vsyncpa [#allocation4], 1 }
 0x40d   :  { %1384 = vsyncpa [#allocation4 + $0x1], 1 }
 0x40e   :  { %1385 = vsyncpa [#allocation7], 1 }
 0x40f   :  { %1387 = vsyncpa [#allocation7 + $0x1], 1 }
 0x410   :  { %1388 = vsyncpa [#allocation10], 1 }
 0x411   :  { %1390 = vsyncpa [#allocation10 + $0x1], 1 }
 0x412   :  { %1391 = vsyncpa [#allocation5], 1 }
 0x413   :  { %1393 = vsyncpa [#allocation5 + $0x1], 1 }

</bundles_post_ra>
